<compile_context>
chip_gen: v6e
topology: v6e:2x2x1
jax: 0.10.0
libtpu: 0.0.40
codegen_flags: <defaults>
</compile_context>

<pallas_src>
import functools

import jax
import jax.numpy as jnp
from jax.experimental import pallas as pl
from jax.experimental.pallas import tpu as pltpu

BN_EPS = 1e-5
LANE = 128


def _round_up(n, m=LANE):
    return ((n + m - 1) // m) * m


# ----------------------------------------------------------------------------
# Kernel
# ----------------------------------------------------------------------------
def _bn_relu(h, gamma, beta):
    """Training-mode BatchNorm1d (batch stats, biased variance) + ReLU."""
    mu = jnp.mean(h, axis=0, keepdims=True)
    d = h - mu
    var = jnp.mean(d * d, axis=0, keepdims=True)        # two-pass: stable
    scale = gamma * jax.lax.rsqrt(var + BN_EPS)          # [1, F]
    return jnp.maximum(d * scale + beta, 0.0)            # one FMA + max / elem


def net_kernel(x_ref, w1_ref, w2_ref, w3_ref, vec_ref, o_ref,
               *, h1p, h2p, out_dim):
    x = x_ref[...].astype(jnp.float32)

    # vec rows: 0=g1, 1=beta1, 2=g2, 3=beta2, 4=b3 (zero-padded), 5..7 unused.
    g1 = vec_ref[0:1, :h1p]
    be1 = vec_ref[1:2, :h1p]
    g2 = vec_ref[2:3, :h2p]
    be2 = vec_ref[3:4, :h2p]
    b3 = vec_ref[4:5, :out_dim]

    # Layer 1: Linear (bias cancels under training-mode BN) -> BN -> ReLU
    h1 = jnp.dot(x, w1_ref[...], preferred_element_type=jnp.float32)
    h1 = _bn_relu(h1, g1, be1)
    # Layer 2
    h2 = jnp.dot(h1, w2_ref[...], preferred_element_type=jnp.float32)
    h2 = _bn_relu(h2, g2, be2)
    # Layer 3: plain Linear (bias kept)
    out = jnp.dot(h2, w3_ref[...], preferred_element_type=jnp.float32) + b3
    o_ref[...] = out.astype(o_ref.dtype)


# ----------------------------------------------------------------------------
# One-time parameter preparation (all padding hoisted out of the hot path)
# ----------------------------------------------------------------------------
def prepare_params(params):
    """Pad/stack parameters once into kernel-ready arrays.

    Invariant: gamma/beta pad lanes and padded weight rows/cols are EXACTLY
    zero, so padded feature lanes stay 0 through BN+ReLU and never leak into
    later layers.  b1/b2 are intentionally dropped (cancelled by BN's mean
    subtraction in training mode).
    """
    in_dim, h1 = params["w1"].shape
    _, h2 = params["w2"].shape
    _, out_dim = params["w3"].shape
    h1p, h2p = _round_up(h1), _round_up(h2)
    sw = max(h1p, h2p, out_dim)          # stacked-vector width

    def pad2d(w, rows, cols):
        return jnp.pad(w, [(0, rows - w.shape[0]), (0, cols - w.shape[1])])

    def padrow(v, width):
        v = v.reshape(1, -1)
        return jnp.pad(v, [(0, 0), (0, width - v.shape[1])])

    w1 = pad2d(params["w1"], in_dim, h1p)    # contraction dim NOT padded
    w2 = pad2d(params["w2"], h1p, h2p)
    w3 = pad2d(params["w3"], h2p, out_dim)   # output dim NOT padded

    vec = jnp.concatenate(
        [padrow(params["g1"], sw), padrow(params["beta1"], sw),
         padrow(params["g2"], sw), padrow(params["beta2"], sw),
         padrow(params["b3"], sw), jnp.zeros((3, sw), jnp.float32)],
        axis=0)                               # [8, sw]  (sublane-padded)

    return {"w1": w1, "w2": w2, "w3": w3, "vec": vec}


# ----------------------------------------------------------------------------
# Forward wrapper (jitted; no per-call padding, single pallas_call)
# ----------------------------------------------------------------------------
@jax.jit
def net_forward(x, prepped):
    """x: [B, in_dim] float32. prepped: output of prepare_params."""
    w1, w2, w3, vec = prepped["w1"], prepped["w2"], prepped["w3"], prepped["vec"]
    B = x.shape[0]
    h1p = w1.shape[1]
    h2p = w2.shape[1]
    out_dim = w3.shape[1]

    args = (x, w1, w2, w3, vec)

    def full(a):
        return pl.BlockSpec(a.shape, lambda: (0,) * a.ndim)

    # Tight VMEM request: inputs + output, double-buffered, + 1 MiB headroom.
    nbytes = (sum(int(a.size) for a in args) + B * out_dim) * 4
    vmem_limit = 2 * nbytes + (1 << 20)

    kernel = functools.partial(net_kernel, h1p=h1p, h2p=h2p, out_dim=out_dim)

    return pl.pallas_call(
        kernel,
        out_shape=jax.ShapeDtypeStruct((B, out_dim), jnp.float32),
        grid=(),  # whole (tiny) problem is VMEM-resident; single invocation
        in_specs=[full(a) for a in args],
        out_specs=pl.BlockSpec((B, out_dim), lambda: (0, 0)),
        compiler_params=pltpu.CompilerParams(vmem_limit_bytes=vmem_limit),
    )(*args)


# ----------------------------------------------------------------------------
# Init + pure-JAX reference (PyTorch semantics, biases included, two-pass BN)
# ----------------------------------------------------------------------------
def init_params(key, in_dim, n_hidden_1, n_hidden_2, out_dim):
    """Deterministic init mimicking PyTorch defaults (U(-1/sqrt(fan_in), +))."""
    ks = jax.random.split(key, 6)

    def linear(kw, kb, fan_in, fan_out):
        bound = 1.0 / jnp.sqrt(jnp.float32(fan_in))
        # stored pre-transposed: [in_features, out_features]
        w = jax.random.uniform(kw, (fan_in, fan_out), jnp.float32, -bound, bound)
        b = jax.random.uniform(kb, (1, fan_out), jnp.float32, -bound, bound)
        return w, b

    w1, b1 = linear(ks[0], ks[1], in_dim, n_hidden_1)
    w2, b2 = linear(ks[2], ks[3], n_hidden_1, n_hidden_2)
    w3, b3 = linear(ks[4], ks[5], n_hidden_2, out_dim)

    return {
        "w1": w1, "b1": b1,
        "g1": jnp.ones((1, n_hidden_1), jnp.float32),
        "beta1": jnp.zeros((1, n_hidden_1), jnp.float32),
        "w2": w2, "b2": b2,
        "g2": jnp.ones((1, n_hidden_2), jnp.float32),
        "beta2": jnp.zeros((1, n_hidden_2), jnp.float32),
        "w3": w3, "b3": b3,
    }


def _reference(x, p):
    def lbr(h, w, b, g, be):
        h = h @ w + b
        mu = h.mean(0, keepdims=True)
        var = ((h - mu) ** 2).mean(0, keepdims=True)
        return jnp.maximum((h - mu) / jnp.sqrt(var + BN_EPS) * g + be, 0.0)

    h = lbr(x, p["w1"], p["b1"], p["g1"], p["beta1"])
    h = lbr(h, p["w2"], p["b2"], p["g2"], p["beta2"])
    return h @ p["w3"] + p["b3"]


if __name__ == "__main__":
    B, in_dim, n_hidden_1, n_hidden_2, out_dim = 8, 32, 64, 32, 16

    key = jax.random.PRNGKey(0)
    k_x, k_p = jax.random.split(key)
    x = jax.random.normal(k_x, (B, in_dim), jnp.float32)
    params = init_params(k_p, in_dim, n_hidden_1, n_hidden_2, out_dim)

    prepped = prepare_params(params)          # one-time; out of the hot path
    prepped = jax.block_until_ready(prepped)

    out = jax.block_until_ready(net_forward(x, prepped))

    ref = _reference(x, params)
    assert out.shape == (B, out_dim)
    assert jnp.allclose(out, ref, atol=2e-4, rtol=2e-4)

    print("KERNEL_OK")
</pallas_src>

<mosaic_0001>
module attributes {stable_mosaic.version = 11 : i64} {
  func.func @net_kernel(%arg0: memref<8x32xf32, #tpu.memory_space<vmem>>, %arg1: memref<32x128xf32, #tpu.memory_space<vmem>>, %arg2: memref<128x128xf32, #tpu.memory_space<vmem>>, %arg3: memref<128x16xf32, #tpu.memory_space<vmem>>, %arg4: memref<8x128xf32, #tpu.memory_space<vmem>>, %arg5: memref<8x16xf32, #tpu.memory_space<vmem>>) attributes {dimension_semantics = [], scalar_prefetch = 0 : i64, scratch_operands = 0 : i64, tpu.core_type = #tpu.core_type<tc>} {
    %c0 = arith.constant 0 : index
    %c0_0 = arith.constant 0 : index
    %0 = vector.load %arg0[%c0, %c0_0] : memref<8x32xf32, #tpu.memory_space<vmem>>, vector<8x32xf32>
    %c0_1 = arith.constant 0 : index
    %c0_2 = arith.constant 0 : index
    %1 = vector.load %arg4[%c0_1, %c0_2] : memref<8x128xf32, #tpu.memory_space<vmem>>, vector<1x128xf32>
    %c1 = arith.constant 1 : index
    %c0_3 = arith.constant 0 : index
    %2 = vector.load %arg4[%c1, %c0_3] : memref<8x128xf32, #tpu.memory_space<vmem>>, vector<1x128xf32>
    %c2 = arith.constant 2 : index
    %c0_4 = arith.constant 0 : index
    %3 = vector.load %arg4[%c2, %c0_4] : memref<8x128xf32, #tpu.memory_space<vmem>>, vector<1x128xf32>
    %c3 = arith.constant 3 : index
    %c0_5 = arith.constant 0 : index
    %4 = vector.load %arg4[%c3, %c0_5] : memref<8x128xf32, #tpu.memory_space<vmem>>, vector<1x128xf32>
    %c4 = arith.constant 4 : index
    %c0_6 = arith.constant 0 : index
    %5 = vector.load %arg4[%c4, %c0_6] : memref<8x128xf32, #tpu.memory_space<vmem>>, vector<1x16xf32>
    %c0_7 = arith.constant 0 : index
    %c0_8 = arith.constant 0 : index
    %6 = vector.load %arg1[%c0_7, %c0_8] : memref<32x128xf32, #tpu.memory_space<vmem>>, vector<32x128xf32>
    %cst = arith.constant dense<0.000000e+00> : vector<8x128xf32>
    %7 = tpu.matmul %0, %6, %cst {dimension_numbers = #tpu.dot_dimension_numbers<[1], [0], [0], [1], [0, 0, 1, 1], [], []>} : vector<8x32xf32>, vector<32x128xf32>, vector<8x128xf32> -> vector<8x128xf32>
    %cst_9 = arith.constant dense<0.000000e+00> : vector<128xf32>
    %8 = vector.multi_reduction <add>, %7, %cst_9 [0] : vector<8x128xf32> to vector<128xf32>
    %9 = vector.shape_cast %8 : vector<128xf32> to vector<1x128xf32>
    %cst_10 = arith.constant 8.000000e+00 : f32
    %10 = vector.broadcast %cst_10 : f32 to vector<1x128xf32>
    %11 = arith.divf %9, %10 : vector<1x128xf32>
    %12 = vector.broadcast %11 : vector<1x128xf32> to vector<8x128xf32>
    %13 = arith.subf %7, %12 : vector<8x128xf32>
    %14 = arith.mulf %13, %13 : vector<8x128xf32>
    %cst_11 = arith.constant dense<0.000000e+00> : vector<128xf32>
    %15 = vector.multi_reduction <add>, %14, %cst_11 [0] : vector<8x128xf32> to vector<128xf32>
    %16 = vector.shape_cast %15 : vector<128xf32> to vector<1x128xf32>
    %cst_12 = arith.constant 8.000000e+00 : f32
    %17 = vector.broadcast %cst_12 : f32 to vector<1x128xf32>
    %18 = arith.divf %16, %17 : vector<1x128xf32>
    %cst_13 = arith.constant 9.99999974E-6 : f32
    %19 = vector.broadcast %cst_13 : f32 to vector<1x128xf32>
    %20 = arith.addf %18, %19 : vector<1x128xf32>
    %21 = math.rsqrt %20 : vector<1x128xf32>
    %22 = arith.mulf %1, %21 : vector<1x128xf32>
    %23 = vector.broadcast %22 : vector<1x128xf32> to vector<8x128xf32>
    %24 = arith.mulf %13, %23 : vector<8x128xf32>
    %25 = vector.broadcast %2 : vector<1x128xf32> to vector<8x128xf32>
    %26 = arith.addf %24, %25 : vector<8x128xf32>
    %cst_14 = arith.constant 0.000000e+00 : f32
    %27 = vector.broadcast %cst_14 : f32 to vector<8x128xf32>
    %28 = arith.maximumf %26, %27 : vector<8x128xf32>
    %c0_15 = arith.constant 0 : index
    %c0_16 = arith.constant 0 : index
    %29 = vector.load %arg2[%c0_15, %c0_16] : memref<128x128xf32, #tpu.memory_space<vmem>>, vector<128x128xf32>
    %cst_17 = arith.constant dense<0.000000e+00> : vector<8x128xf32>
    %30 = tpu.matmul %28, %29, %cst_17 {dimension_numbers = #tpu.dot_dimension_numbers<[1], [0], [0], [1], [0, 0, 1, 1], [], []>} : vector<8x128xf32>, vector<128x128xf32>, vector<8x128xf32> -> vector<8x128xf32>
    %cst_18 = arith.constant dense<0.000000e+00> : vector<128xf32>
    %31 = vector.multi_reduction <add>, %30, %cst_18 [0] : vector<8x128xf32> to vector<128xf32>
    %32 = vector.shape_cast %31 : vector<128xf32> to vector<1x128xf32>
    %cst_19 = arith.constant 8.000000e+00 : f32
    %33 = vector.broadcast %cst_19 : f32 to vector<1x128xf32>
    %34 = arith.divf %32, %33 : vector<1x128xf32>
    %35 = vector.broadcast %34 : vector<1x128xf32> to vector<8x128xf32>
    %36 = arith.subf %30, %35 : vector<8x128xf32>
    %37 = arith.mulf %36, %36 : vector<8x128xf32>
    %cst_20 = arith.constant dense<0.000000e+00> : vector<128xf32>
    %38 = vector.multi_reduction <add>, %37, %cst_20 [0] : vector<8x128xf32> to vector<128xf32>
    %39 = vector.shape_cast %38 : vector<128xf32> to vector<1x128xf32>
    %cst_21 = arith.constant 8.000000e+00 : f32
    %40 = vector.broadcast %cst_21 : f32 to vector<1x128xf32>
    %41 = arith.divf %39, %40 : vector<1x128xf32>
    %cst_22 = arith.constant 9.99999974E-6 : f32
    %42 = vector.broadcast %cst_22 : f32 to vector<1x128xf32>
    %43 = arith.addf %41, %42 : vector<1x128xf32>
    %44 = math.rsqrt %43 : vector<1x128xf32>
    %45 = arith.mulf %3, %44 : vector<1x128xf32>
    %46 = vector.broadcast %45 : vector<1x128xf32> to vector<8x128xf32>
    %47 = arith.mulf %36, %46 : vector<8x128xf32>
    %48 = vector.broadcast %4 : vector<1x128xf32> to vector<8x128xf32>
    %49 = arith.addf %47, %48 : vector<8x128xf32>
    %cst_23 = arith.constant 0.000000e+00 : f32
    %50 = vector.broadcast %cst_23 : f32 to vector<8x128xf32>
    %51 = arith.maximumf %49, %50 : vector<8x128xf32>
    %c0_24 = arith.constant 0 : index
    %c0_25 = arith.constant 0 : index
    %52 = vector.load %arg3[%c0_24, %c0_25] : memref<128x16xf32, #tpu.memory_space<vmem>>, vector<128x16xf32>
    %cst_26 = arith.constant dense<0.000000e+00> : vector<8x16xf32>
    %53 = tpu.matmul %51, %52, %cst_26 {dimension_numbers = #tpu.dot_dimension_numbers<[1], [0], [0], [1], [0, 0, 1, 1], [], []>} : vector<8x128xf32>, vector<128x16xf32>, vector<8x16xf32> -> vector<8x16xf32>
    %54 = vector.broadcast %5 : vector<1x16xf32> to vector<8x16xf32>
    %55 = arith.addf %53, %54 : vector<8x16xf32>
    %c0_27 = arith.constant 0 : index
    %c0_28 = arith.constant 0 : index
    %56 = vector.load %arg5[%c0_27, %c0_28] : memref<8x16xf32, #tpu.memory_space<vmem>>, vector<8x16xf32>
    tpu.vector_store %arg5[%c0_27, %c0_28], %55 {strides = array<i32>} : memref<8x16xf32, #tpu.memory_space<vmem>>, vector<8x16xf32>,
    return
  }
}

</mosaic_0001>

<bundles_post_ra>
// kernel: net_forward.1
= control target key start
LH: loop header
LB: loop body
LE: loop exit
PB: predicated region body
PF: predicated region fallthrough
CT: control target
= control target key end

     0   :  { %10 = vsyncpa [#allocation3], 0  ;;  %s756_s0 = inlined_call_operand.vmem [shape: f32[8,32], index: 0, kind: input, shape index: {}]   ;;  %s757_s1 = inlined_call_operand.hbm [shape: f32[32,128], index: 1, kind: input, shape index: {}]   ;;  %s758_s2 = inlined_call_operand.vmem [shape: f32[128,128], index: 2, kind: input, shape index: {}]   ;;  %s759_s3 = inlined_call_operand.vmem [shape: f32[128,16], index: 3, kind: input, shape index: {}]   ;;  %s760_s4 = inlined_call_operand.vmem [shape: f32[8,128], index: 4, kind: input, shape index: {}]   ;;  %s761_s5 = inlined_call_operand.hbm [shape: f32[8,16], index: 5, kind: output, shape index: {}]  }
   0x1   :  { %11 = vsyncpa [#allocation4], 0  ;;  %s551_s18 = smov [#allocation2]  }
   0x2   :  { %s19_s19 = sshll.u32 %s551_s18, 4  ;;  %s20_s19 = int_to_ptr.vmem [resolvable:$true] %s19_s19 }
   0x3   :  { %s515_s20 = scalar_lea.vmem %s20_s19, 512  ;;  %p520_p1 = scmp.lt.s32.totalorder %s20_s19, %s20_s19 }
   0x4   :  { %p516_p0 = scmp.ne.s32.totalorder %s20_s19, %s515_s20  ;;  %p521_p2 = scmp.lt.s32.totalorder %s515_s20, %s515_s20 }
   0x6   :  { %p522_p3 = por %p521_p2, %p520_p1 }
   0x8   :  { %p523_p4 = pnand %p522_p3, %p516_p0 }
   0xa   :  { %526 = shalt.err (!%p523_p4)
}
   0xb   :  { %s552_s21 = smov 128   ;;  %s553_s22 = smov 8  }
   0xc   :  { %25 = dma.hbm_to_vmem [thread:$0]  %s757_s1, 512, %s20_s19, [#allocation3], %s552_s21, %s552_s21, %s553_s22  }
   0xd   :  { %547 = dma.done.wait [#allocation3], 512  }
   0xe   :  { %548 = vsyncadd [#allocation3], 4294966784  ;;  %v554_v0 = vmov 0.0   ;;  %vm555_vm0 = vmmov 0   ;;  %v44_v1 = vld [vmem:[#allocation2 + $0x18] sm:$0xff]  ;;  %v43_v2 = vld [vmem:[#allocation2 + $0x10] sm:$0xff]  ;;  %v139_v41 = vlaneseq }
   0xf   :  { %416 = vmatprep.subr.mxu0 %v554_v0  ;;  %424 = vmatprep.mubr.msk.f32.mxu0 %vm555_vm0, %v554_v0  ;;  %v42_v3 = vld [vmem:[#allocation2 + $0x8] sm:$0xff]  ;;  %v41_v4 = vld [vmem:[#allocation2] sm:$0xff]  ;;  %vm45_vm1 = vcmask 261120   ;;  %v165_v6 = vld [vmem:[%s758_s2 + $0x78] sm:$0xff]  ;;  %s556_s17 = smov [#allocation5]   ;;  %vm356_vm2 = vcmask 130048  }
  0x10   :  { %427 = vmatprep.subr.mxu1 %v554_v0  ;;  %459 = vmatprep.mubr.msk.f32.mxu1 %vm555_vm0, %v554_v0  ;;  %v35_v5 = vld [vmem:[%s756_s0] sm:$0xff]  ;;  %v164_v7 = vld [vmem:[%s758_s2 + $0x70] sm:$0xff]  ;;  %v163_v8 = vld [vmem:[%s758_s2 + $0x68] sm:$0xff]  ;;  %v668_v42 = vshrl.u32 %v139_v41, 7  ;;  %s364_s18 = sshll.u32 %s556_s17, 4  ;;  %s365_s18 = int_to_ptr.vmem [resolvable:$true] %s364_s18 }
  0x11   :  { %417 = vmatpush3.msra.mxu0 %v44_v1  ;;  %428 = vmatpush3.msra.mxu1 %v165_v6  ;;  %v162_v9 = vld [vmem:[%s758_s2 + $0x60] sm:$0xff]  ;;  %v161_v10 = vld [vmem:[%s758_s2 + $0x58] sm:$0xff]  ;;  %v160_v11 = vld [vmem:[%s758_s2 + $0x50] sm:$0xff]  ;;  %s527_s19 = scalar_lea.vmem %s365_s18, 128  ;;  %p532_p6 = scmp.lt.s32.totalorder %s365_s18, %s365_s18 }
  0x12   :  { %418 = vmatprep.subr.mxu0 %v554_v0  ;;  %429 = vmatprep.subr.mxu1 %v554_v0  ;;  %v159_v12 = vld [vmem:[%s758_s2 + $0x48] sm:$0xff]  ;;  %v158_v13 = vld [vmem:[%s758_s2 + $0x40] sm:$0xff]  ;;  %v157_v14 = vld [vmem:[%s758_s2 + $0x38] sm:$0xff]  ;;  %v141_v44 = vsub.s32 0, %v668_v42  ;;  %p528_p5 = scmp.ne.s32.totalorder %s365_s18, %s527_s19  ;;  %p533_p7 = scmp.lt.s32.totalorder %s527_s19, %s527_s19 }
  0x13   :  { %419 = vmatpush3.msra.mxu0 %v43_v2  ;;  %430 = vmatpush3.msra.mxu1 %v164_v7  ;;  %v156_v15 = vld [vmem:[%s758_s2 + $0x30] sm:$0xff]  ;;  %v155_v16 = vld [vmem:[%s758_s2 + $0x28] sm:$0xff]  ;;  %v154_v17 = vld [vmem:[%s758_s2 + $0x20] sm:$0xff] }
  0x14   :  { %420 = vmatprep.subr.mxu0 %v554_v0  ;;  %431 = vmatprep.subr.mxu1 %v554_v0  ;;  %v153_v18 = vld [vmem:[%s758_s2 + $0x18] sm:$0xff]  ;;  %v152_v19 = vld [vmem:[%s758_s2 + $0x10] sm:$0xff]  ;;  %v151_v20 = vld [vmem:[%s758_s2 + $0x8] sm:$0xff]  ;;  %p534_p8 = por %p533_p7, %p532_p6 }
  0x15   :  { %421 = vmatpush3.msra.mxu0 %v42_v3  ;;  %432 = vmatpush3.msra.mxu1 %v163_v8  ;;  %v150_v21 = vld [vmem:[%s758_s2] sm:$0xff]  ;;  %v281_v52 = vld [vmem:[%s759_s3 + $0x78] sm:$0xff]  ;;  %v280_v53 = vld [vmem:[%s759_s3 + $0x70] sm:$0xff] }
  0x16   :  { %422 = vmatprep.subr.mxu0 %v554_v0  ;;  %433 = vmatprep.subr.mxu1 %v554_v0  ;;  %v36_v43 = vld [vmem:[%s760_s4] sm:$0x1]  ;;  %v374_v48 = vld [vmem:[%s760_s4 + $0x1] ss:$0 sm:$0xff]  ;;  %v279_v54 = vld [vmem:[%s759_s3 + $0x68] sm:$0xff]  ;;  %p535_p9 = pnand %p534_p8, %p528_p5 }
  0x17   :  { %423 = vmatpush3.msra.mxu0 %v41_v4  ;;  %434 = vmatpush3.msra.mxu1 %v162_v9  ;;  %v278_v55 = vld [vmem:[%s759_s3 + $0x60] sm:$0xff]  ;;  %v277_v56 = vld [vmem:[%s759_s3 + $0x58] sm:$0xff]  ;;  %v276_v57 = vld [vmem:[%s759_s3 + $0x50] sm:$0xff] }
  0x18   :  { %425 = vmatmul.mubr.msk.f32.vlgmr.msra.gmra.mxu0 %vm45_vm1, %v35_v5  ;;  %462 = vmatprep.subr.mxu0 %v554_v0  ;;  %v275_v58 = vld [vmem:[%s759_s3 + $0x48] sm:$0xff]  ;;  %v274_v59 = vld [vmem:[%s759_s3 + $0x40] sm:$0xff]  ;;  %v273_v60 = vld [vmem:[%s759_s3 + $0x38] sm:$0xff] }
  0x19   :  { %494 = vmatprep.mubr.msk.f32.mxu0 %vm555_vm0, %v554_v0  ;;  %435 = vmatprep.subr.mxu1 %v554_v0  ;;  %v272_v61 = vld [vmem:[%s759_s3 + $0x30] sm:$0xff]  ;;  %v271_v62 = vld [vmem:[%s759_s3 + $0x28] sm:$0xff]  ;;  %v270_v63 = vld [vmem:[%s759_s3 + $0x20] sm:$0xff] }
  0x1a   :  { %436 = vmatpush3.msra.mxu1 %v161_v10  ;;  %463 = vmatpush3.msra.mxu0 %v281_v52  ;;  %v269_v1 = vld [vmem:[%s759_s3 + $0x18] sm:$0xff]  ;;  %v268_v2 = vld [vmem:[%s759_s3 + $0x10] sm:$0xff]  ;;  %v267_v3 = vld [vmem:[%s759_s3 + $0x8] sm:$0xff] }
  0x1b   :  { %437 = vmatprep.subr.mxu1 %v554_v0  ;;  %464 = vmatprep.subr.mxu0 %v554_v0  ;;  %v266_v4 = vld [vmem:[%s759_s3] sm:$0xff] }
  0x1c   :  { %438 = vmatpush3.msra.mxu1 %v160_v11  ;;  %465 = vmatpush3.msra.mxu0 %v280_v53 }
  0x1d   :  { %439 = vmatprep.subr.mxu1 %v554_v0  ;;  %466 = vmatprep.subr.mxu0 %v554_v0 }
  0x1e   :  { %440 = vmatpush3.msra.mxu1 %v159_v12  ;;  %467 = vmatpush3.msra.mxu0 %v279_v54 }
  0x1f   :  { %441 = vmatprep.subr.mxu1 %v554_v0  ;;  %468 = vmatprep.subr.mxu0 %v554_v0 }
  0x20   :  { %442 = vmatpush3.msra.mxu1 %v158_v13  ;;  %469 = vmatpush3.msra.mxu0 %v278_v55 }
  0x21   :  { %443 = vmatprep.subr.mxu1 %v554_v0  ;;  %470 = vmatprep.subr.mxu0 %v554_v0 }
  0x22   :  { %444 = vmatpush3.msra.mxu1 %v157_v14  ;;  %471 = vmatpush3.msra.mxu0 %v277_v56 }
  0x23   :  { %445 = vmatprep.subr.mxu1 %v554_v0  ;;  %472 = vmatprep.subr.mxu0 %v554_v0 }
  0x24   :  { %446 = vmatpush3.msra.mxu1 %v156_v15  ;;  %473 = vmatpush3.msra.mxu0 %v276_v57 }
  0x25   :  { %447 = vmatprep.subr.mxu1 %v554_v0  ;;  %474 = vmatprep.subr.mxu0 %v554_v0 }
  0x26   :  { %448 = vmatpush3.msra.mxu1 %v155_v16  ;;  %475 = vmatpush3.msra.mxu0 %v275_v58 }
  0x27   :  { %449 = vmatprep.subr.mxu1 %v554_v0  ;;  %476 = vmatprep.subr.mxu0 %v554_v0 }
  0x28   :  { %450 = vmatpush3.msra.mxu1 %v154_v17  ;;  %477 = vmatpush3.msra.mxu0 %v274_v59 }
  0x29   :  { %451 = vmatprep.subr.mxu1 %v554_v0  ;;  %478 = vmatprep.subr.mxu0 %v554_v0 }
  0x2a   :  { %452 = vmatpush3.msra.mxu1 %v153_v18  ;;  %479 = vmatpush3.msra.mxu0 %v273_v60 }
  0x2b   :  { %453 = vmatprep.subr.mxu1 %v554_v0  ;;  %480 = vmatprep.subr.mxu0 %v554_v0 }
  0x2c   :  { %454 = vmatpush3.msra.mxu1 %v152_v19  ;;  %481 = vmatpush3.msra.mxu0 %v272_v61 }
  0x2d   :  { %455 = vmatprep.subr.mxu1 %v554_v0  ;;  %482 = vmatprep.subr.mxu0 %v554_v0 }
  0x2e   :  { %456 = vmatpush3.msra.mxu1 %v151_v20  ;;  %483 = vmatpush3.msra.mxu0 %v271_v62 }
  0x2f   :  { %457 = vmatprep.subr.mxu1 %v554_v0  ;;  %484 = vmatprep.subr.mxu0 %v554_v0 }
  0x30   :  { %458 = vmatpush3.msra.mxu1 %v150_v21  ;;  %485 = vmatpush3.msra.mxu0 %v270_v63 }
  0x31   :  { %486 = vmatprep.subr.mxu0 %v554_v0 }
  0x32   :  { %487 = vmatpush3.msra.mxu0 %v269_v1 }
  0x33   :  { %488 = vmatprep.subr.mxu0 %v554_v0 }
  0x34   :  { %489 = vmatpush3.msra.mxu0 %v268_v2 }
  0x35   :  { %490 = vmatprep.subr.mxu0 %v554_v0 }
  0x36   :  { %491 = vmatpush3.msra.mxu0 %v267_v3 }
  0x37   :  { %492 = vmatprep.subr.mxu0 %v554_v0 }
  0x38   :  { %493 = vmatpush3.msra.mxu0 %v266_v4 }
  0xd8   :  { %v115_v22 = vpop.f32.mrf.mxu0 }
  0xd9   :  { %v119_v23 = vrot.slane %v115_v22, 4 }
  0xda   :  { %v426_v24 = vpop.f32.mrf.mxu0 }
  0xdb   :  { %v120_v25 = vadd.f32 %v119_v23, %v115_v22  ;;  %v38_v23 = vld [vmem:[%s760_s4 + $0x2] sm:$0x1] }
  0xdd   :  { %v121_v26 = vrot.slane %v120_v25, 2 }
  0xdf   :  { %v122_v27 = vadd.f32 %v121_v26, %v120_v25 }
  0xe1   :  { %v123_v28 = vrot.slane %v122_v27, 1 }
  0xe3   :  { %v124_v29 = vadd.f32 %v123_v28, %v122_v27  ;;  %v375_v27 = vld [vmem:[%s760_s4 + $0x3] ss:$0 sm:$0xff] }
  0xe5   :  { %v126_v30 = vmul.f32 0.125, %v124_v29 }
  0xe7   :  { %v127_v31 = vsub.f32 %v115_v22, %v126_v30 }
  0xe9   :  { %v128_v32 = vmul.f32 %v127_v31, %v127_v31 }
  0xeb   :  { %v129_v33 = vrot.slane %v128_v32, 4 }
  0xed   :  { %v130_v34 = vadd.f32 %v129_v33, %v128_v32 }
  0xef   :  { %v131_v35 = vrot.slane %v130_v34, 2 }
  0xf1   :  { %v132_v36 = vadd.f32 %v131_v35, %v130_v34 }
  0xf3   :  { %v133_v37 = vrot.slane %v132_v36, 1 }
  0xf5   :  { %v134_v38 = vadd.f32 %v133_v37, %v132_v36 }
  0xf7   :  { %v135_v39 = vmul.f32 0.125, %v134_v38 }
  0xf9   :  { %v136_v40 = vadd.f32 1e-05, %v135_v39 }
  0xfb   :  { %503 = vrsqrt.f32 %v136_v40 }
 0x108   :  { %v504_v45 = vpop.eup %503 }
 0x109   :  { %v138_v46 = vmul.f32 %v504_v45, %v36_v43 }
 0x10b   :  { %v142_v47 = vrot.slane %v138_v46, %v141_v44 }
 0x10d   :  { %v143_v49 = vmul.f32 %v142_v47, %v127_v31  ;;  %v376_v31 = vld [vmem:[%s760_s4 + $0x4] ss:$0 sm:$0xff] }
 0x10f   :  { %v148_v50 = vadd.f32 %v374_v48, %v143_v49 }
 0x111   :  { %v149_v51 = vmax.f32 %v148_v50, 0.0 }
 0x113   :  { %460 = vmatmul.mubr.f32.vlgmr.msra.gmra.mxu1 %v149_v51 }
 0x1d3   :  { %v232_v5 = vpop.f32.mrf.mxu1 }
 0x1d4   :  { %v236_v6 = vrot.slane %v232_v5, 4 }
 0x1d5   :  { %v461_v7 = vpop.f32.mrf.mxu1 }
 0x1d6   :  { %v237_v8 = vadd.f32 %v236_v6, %v232_v5 }
 0x1d8   :  { %v238_v9 = vrot.slane %v237_v8, 2 }
 0x1da   :  { %v239_v10 = vadd.f32 %v238_v9, %v237_v8 }
 0x1dc   :  { %v240_v11 = vrot.slane %v239_v10, 1 }
 0x1de   :  { %v241_v12 = vadd.f32 %v240_v11, %v239_v10 }
 0x1e0   :  { %v242_v13 = vmul.f32 0.125, %v241_v12 }
 0x1e2   :  { %v243_v14 = vsub.f32 %v232_v5, %v242_v13 }
 0x1e4   :  { %v244_v15 = vmul.f32 %v243_v14, %v243_v14 }
 0x1e6   :  { %v245_v16 = vrot.slane %v244_v15, 4 }
 0x1e8   :  { %v246_v17 = vadd.f32 %v245_v16, %v244_v15 }
 0x1ea   :  { %v247_v18 = vrot.slane %v246_v17, 2 }
 0x1ec   :  { %v248_v19 = vadd.f32 %v247_v18, %v246_v17 }
 0x1ee   :  { %v249_v20 = vrot.slane %v248_v19, 1 }
 0x1f0   :  { %v250_v21 = vadd.f32 %v249_v20, %v248_v19 }
 0x1f2   :  { %v251_v22 = vmul.f32 0.125, %v250_v21 }
 0x1f4   :  { %v252_v0 = vadd.f32 1e-05, %v251_v22 }
 0x1f6   :  { %505 = vrsqrt.f32 %v252_v0 }
 0x203   :  { %v506_v24 = vpop.eup %505 }
 0x204   :  { %v254_v25 = vmul.f32 %v506_v24, %v38_v23 }
 0x206   :  { %v258_v26 = vrot.slane %v254_v25, %v141_v44 }
 0x208   :  { %v259_v28 = vmul.f32 %v258_v26, %v243_v14 }
 0x20a   :  { %v264_v29 = vadd.f32 %v375_v27, %v259_v28 }
 0x20c   :  { %v265_v30 = vmax.f32 %v264_v29, 0.0 }
 0x20e   :  { %495 = vmatmul.mubr.f32.vlgmr.msra.gmra.mxu0 %v265_v30 }
 0x2ce   :  { %v352_v32 = vpop.f32.mrf.mxu0 }
 0x2cf   :  { %v353_v33 = vadd.f32 %v376_v31, %v352_v32 }
 0x2d0   :  { %v496_v34 = vpop.f32.mrf.mxu0 }
 0x2d1   :  { %357 = vst.msk [vmem:[#allocation5] sm:$0xff] %vm356_vm2, %v353_v33 }
 0x2d2   :  { %538 = shalt.err (!%p535_p9)
}
 0x2d3   :  { %367 = dma.vmem_to_hbm [thread:$0]  %s365_s18, 128, %s761_s5, [#allocation4]  }
 0x2d4   :  { %549 = dma.done.wait [#allocation4], 128  }
 0x2d5   :  { %550 = vsyncadd [#allocation4], 4294967168 }
 0x2d6   :  { %371 = vsyncpa [#allocation3], 1 }
 0x2d7   :  { %372 = vsyncpa [#allocation4], 1 }

</bundles_post_ra>
